<compile_context>
chip_gen: v6e
topology: v6e:2x2x1
jax: 0.10.0
libtpu: 0.0.40
codegen_flags: <defaults>
</compile_context>

<pallas_src>
import functools

import jax
import jax.numpy as jnp
import numpy as np
from jax.experimental import pallas as pl
from jax.experimental.pallas import tpu as pltpu


# ----------------------------- Pallas kernels --------------------------------
def _attention_pool_and_phi(psi, omg, w1p_ref, b1p_ref, w2p_ref, b2p_ref,
                            out_ref):
    """Softmax-attention pooling over the set axis + phi MLP, all in f32."""
    # Softmax weights are NOT materialized:
    #   pooled = (sum_j e_j * psi_j) / (sum_j e_j)
    m = jnp.max(omg, axis=1, keepdims=True)
    e = jnp.exp(omg - m)
    den = jnp.sum(e, axis=1)                         # (tb, P)
    num = jnp.sum(e * psi, axis=1)                   # (tb, P)
    pooled = num * pl.reciprocal(den, approx=True)   # EUP, ~free slot

    hp = jnp.dot(pooled.astype(w1p_ref.dtype), w1p_ref[...],
                 preferred_element_type=jnp.float32) + b1p_ref[...]
    hp = jnp.maximum(hp, 0.0)
    y = jnp.dot(hp.astype(w2p_ref.dtype), w2p_ref[...],
                preferred_element_type=jnp.float32) + b2p_ref[...]
    out_ref[...] = y.astype(out_ref.dtype)


def _perm_inv_kernel_fused(x_ref,
                           w1_ref, b1_ref, w2_ref, b2_ref,
                           w1p_ref, b1p_ref, w2p_ref, b2p_ref,
                           out_ref, *, n_set, n_psi_out):
    """Small-dim path: psi/omega fc1 fused into one (F_in, 2H) matmul and their
    fc2 into one block-diagonal (2H, 2P) matmul (free when H, P < 128)."""
    rows, _ = x_ref.shape                 # rows = tile_b * n_set (static)
    tb = rows // n_set
    p = n_psi_out

    h = jnp.dot(x_ref[...], w1_ref[...],
                preferred_element_type=jnp.float32) + b1_ref[...]
    h = jnp.maximum(h, 0.0)                                     # ReLU (f32)
    po = jnp.dot(h.astype(w2_ref.dtype), w2_ref[...],
                 preferred_element_type=jnp.float32) + b2_ref[...]
    po = po.reshape(tb, n_set, 2 * p)     # free sublane regroup (n_set % 8 == 0)
    psi = po[:, :, :p]
    omg = po[:, :, p:]
    _attention_pool_and_phi(psi, omg, w1p_ref, b1p_ref, w2p_ref, b2p_ref,
                            out_ref)


def _perm_inv_kernel_split(x_ref,
                           w1s_ref, b1s_ref, w2s_ref, b2s_ref,    # psi net
                           w1o_ref, b1o_ref, w2o_ref, b2o_ref,    # omega net
                           w1p_ref, b1p_ref, w2p_ref, b2p_ref,    # phi net
                           out_ref, *, n_set):
    """Large-dim path (H or P >= 128): separate psi / omega pipelines -> no
    zero-padded block-diagonal FLOPs and no lane slicing at non-128 offsets."""
    rows, _ = x_ref.shape
    tb = rows // n_set
    x = x_ref[...]

    hs = jnp.maximum(jnp.dot(x, w1s_ref[...],
                             preferred_element_type=jnp.float32) + b1s_ref[...],
                     0.0)
    psi = jnp.dot(hs.astype(w2s_ref.dtype), w2s_ref[...],
                  preferred_element_type=jnp.float32) + b2s_ref[...]

    ho = jnp.maximum(jnp.dot(x, w1o_ref[...],
                             preferred_element_type=jnp.float32) + b1o_ref[...],
                     0.0)
    omg = jnp.dot(ho.astype(w2o_ref.dtype), w2o_ref[...],
                  preferred_element_type=jnp.float32) + b2o_ref[...]

    p = psi.shape[-1]
    psi = psi.reshape(tb, n_set, p)
    omg = omg.reshape(tb, n_set, p)
    _attention_pool_and_phi(psi, omg, w1p_ref, b1p_ref, w2p_ref, b2p_ref,
                            out_ref)


# ----------------------------- parameters ------------------------------------
def _init_linear(key, fan_in, fan_out):
    # PyTorch nn.Linear default init: U(-1/sqrt(fan_in), 1/sqrt(fan_in)).
    # Weight stored as (in, out) so the kernel computes x @ W.
    kw, kb = jax.random.split(key)
    bound = 1.0 / np.sqrt(fan_in)
    w = jax.random.uniform(kw, (fan_in, fan_out), jnp.float32,
                           minval=-bound, maxval=bound)
    b = jax.random.uniform(kb, (1, fan_out), jnp.float32,
                           minval=-bound, maxval=bound)
    return w, b


def init_perm_invariant_params(key, n_features_in, n_hidden_psi, n_output_psi,
                               n_hidden_phi, n_features_out,
                               matmul_dtype=jnp.bfloat16):
    k = jax.random.split(key, 6)
    w1_psi, b1_psi = _init_linear(k[0], n_features_in, n_hidden_psi)
    w2_psi, b2_psi = _init_linear(k[1], n_hidden_psi, n_output_psi)
    w1_omg, b1_omg = _init_linear(k[2], n_features_in, n_hidden_psi)
    w2_omg, b2_omg = _init_linear(k[3], n_hidden_psi, n_output_psi)
    w1_phi, b1_phi = _init_linear(k[4], n_output_psi, n_hidden_phi)
    w2_phi, b2_phi = _init_linear(k[5], n_hidden_phi, n_features_out)

    raw = dict(w1_psi=w1_psi, b1_psi=b1_psi, w2_psi=w2_psi, b2_psi=b2_psi,
               w1_omg=w1_omg, b1_omg=b1_omg, w2_omg=w2_omg, b2_omg=b2_omg,
               w1_phi=w1_phi, b1_phi=b1_phi, w2_phi=w2_phi, b2_phi=b2_phi)

    H, P = n_hidden_psi, n_output_psi
    md = matmul_dtype
    phi = dict(w1_phi=w1_phi.astype(md), b1_phi=b1_phi,
               w2_phi=w2_phi.astype(md), b2_phi=b2_phi)

    if H < 128 and P < 128:
        # Small dims: fuse fc1 (shared input) and block-diag fc2. Below one MXU
        # tile the zero padding is free and it halves MXU issue count.
        w1_cat = jnp.concatenate([w1_psi, w1_omg], axis=1).astype(md)   # (F,2H)
        b1_cat = jnp.concatenate([b1_psi, b1_omg], axis=1)              # (1,2H)
        w2_blk = jnp.zeros((2 * H, 2 * P), jnp.float32)
        w2_blk = w2_blk.at[:H, :P].set(w2_psi).at[H:, P:].set(w2_omg)
        b2_cat = jnp.concatenate([b2_psi, b2_omg], axis=1)              # (1,2P)
        packed = dict(w1=w1_cat, b1=b1_cat, w2=w2_blk.astype(md), b2=b2_cat,
                      **phi)
    else:
        # Large dims: keep psi / omega separate (no zero-padded FLOPs).
        packed = dict(w1_psi=w1_psi.astype(md), b1_psi=b1_psi,
                      w2_psi=w2_psi.astype(md), b2_psi=b2_psi,
                      w1_omg=w1_omg.astype(md), b1_omg=b1_omg,
                      w2_omg=w2_omg.astype(md), b2_omg=b2_omg,
                      **phi)
    return raw, packed


# ----------------------------- tiling helpers ---------------------------------
def _round_up(v, m):
    return -(-v // m) * m


def _round_down(v, m):
    return (v // m) * m


def _vmem_budget_bytes():
    """Per-generation scoped-VMEM budget (leave headroom below physical)."""
    kind = ""
    try:
        kind = jax.devices()[0].device_kind.replace(" ", "").lower()
    except Exception:
        pass
    if "v2" in kind or "v3" in kind:
        return 12 * 1024 * 1024
    if "v4" in kind or "v5" in kind or "v6" in kind:
        return 96 * 1024 * 1024          # 128 MiB physical
    return 48 * 1024 * 1024              # v7x-class (64 MiB / TC) or unknown


def _estimate_vmem_bytes(tile_b, n_set, f_in, h, p, f_out, weight_slabs):
    """Lane/sublane-padding-aware VMEM estimate for one grid step."""
    rows = tile_b * n_set
    # streamed bf16 x block, double-buffered (lane-padded to 128 when F_in<128)
    x_bytes = 2 * _round_up(rows, 16) * _round_up(f_in, 128) * 2
    # f32 output block, double-buffered
    o_bytes = 2 * _round_up(tile_b, 8) * _round_up(f_out, 128) * 4
    # VMEM-resident weights/biases (Buffered(1) -> single buffer)
    w_bytes = 0
    for a in weight_slabs:
        sub = 8 if a.dtype.itemsize == 4 else 16
        r = a.shape[0] if a.ndim == 2 else 1
        c = a.shape[-1]
        w_bytes += _round_up(r, sub) * _round_up(c, 128) * a.dtype.itemsize
    # live f32 temporaries: hidden activations + psi/omega/e/e*psi
    tmp_bytes = rows * (2 * _round_up(h, 128) + 4 * _round_up(p, 128)) * 4
    return x_bytes + o_bytes + w_bytes + tmp_bytes


def _choose_tile_b(B, n_set, f_in, h, p, f_out, weight_slabs, budget,
                   requested=None):
    if B <= 8:
        return B                          # block == full extent, grid = 1
    if requested is not None:
        cap = _round_down(min(int(requested), B), 8)
    else:
        # Guarantee >= 2 grid steps (>= 4 when B allows): keeps the DMA
        # pipeline busy and lets v7x megacore shard the parallel batch axis.
        if B >= 32:
            cap = B // 4
        elif B >= 16:
            cap = B // 2
        else:
            cap = B
        cap = _round_down(cap, 8)
    tile_b = max(8, cap)
    # shrink until the per-step footprint fits the VMEM budget
    while tile_b > 8 and _estimate_vmem_bytes(tile_b, n_set, f_in, h, p, f_out,
                                              weight_slabs) > budget:
        tile_b = max(8, _round_down(tile_b // 2, 8))
    return tile_b


def _resident_spec(arr):
    """Full-extent block + constant index map -> stays in VMEM across steps.
    Buffered(1): never re-fetched, so a second pipeline buffer is pure waste."""
    idx = lambda i: (0,) * arr.ndim
    buffered = getattr(pl, "Buffered", None)
    if buffered is not None:
        try:
            return pl.BlockSpec(arr.shape, idx, pipeline_mode=buffered(1))
        except TypeError:
            pass
    return pl.BlockSpec(arr.shape, idx)


# ----------------------------- wrapper ----------------------------------------
@functools.partial(jax.jit, static_argnames=("tile_b",))
def perm_invariant_forward(x, packed, tile_b=None):
    B, N, F_in = x.shape
    if N % 8 != 0:
        raise ValueError("set size must be a multiple of 8 (f32 sublanes)")

    fused = "w1" in packed
    if fused:
        H = packed["w1"].shape[1] // 2
        P = packed["w2"].shape[1] // 2
        slab_keys = ("w1", "b1", "w2", "b2",
                     "w1_phi", "b1_phi", "w2_phi", "b2_phi")
    else:
        H = packed["w1_psi"].shape[1]
        P = packed["w2_psi"].shape[1]
        slab_keys = ("w1_psi", "b1_psi", "w2_psi", "b2_psi",
                     "w1_omg", "b1_omg", "w2_omg", "b2_omg",
                     "w1_phi", "b1_phi", "w2_phi", "b2_phi")
    flat = [packed[k] for k in slab_keys]
    H_phi = packed["w1_phi"].shape[1]
    F_out = packed["w2_phi"].shape[1]

    budget = _vmem_budget_bytes()
    tb = _choose_tile_b(B, N, F_in, H, P, F_out, flat, budget, tile_b)
    grid = pl.cdiv(B, tb)

    # Pre-flatten host-side (free row-major reshape) and narrow the only
    # HBM-streamed operand to the matmul dtype (bf16).
    x_flat = x.reshape(B * N, F_in).astype(flat[0].dtype)

    if fused:
        kernel = functools.partial(_perm_inv_kernel_fused, n_set=N,
                                   n_psi_out=P)
    else:
        kernel = functools.partial(_perm_inv_kernel_split, n_set=N)

    flops = int(2 * B * N * (F_in * 2 * H + 2 * H * P)
                + 2 * B * (P * H_phi + H_phi * F_out))
    transcendentals = int(B * N * P)                       # exp in the softmax
    bytes_accessed = int(x_flat.size * x_flat.dtype.itemsize
                         + B * F_out * 4
                         + sum(a.size * a.dtype.itemsize for a in flat))

    out = pl.pallas_call(
        kernel,
        out_shape=jax.ShapeDtypeStruct((B, F_out), jnp.float32),
        grid=(grid,),
        in_specs=[pl.BlockSpec((tb * N, F_in), lambda i: (i, 0))]
                 + [_resident_spec(a) for a in flat],
        out_specs=pl.BlockSpec((tb, F_out), lambda i: (i, 0)),
        compiler_params=pltpu.CompilerParams(
            dimension_semantics=("parallel",),             # megacore on v7x
            vmem_limit_bytes=int(budget)),
        cost_estimate=pl.CostEstimate(flops=flops,
                                      transcendentals=transcendentals,
                                      bytes_accessed=bytes_accessed),
    )(x_flat, *flat)
    return out


# ---------------- pure-JAX reference (mirrors the PyTorch code) ---------------
def _ref_ff(x, w1, b1, w2, b2):
    h = jnp.maximum(jnp.dot(x, w1) + b1, 0.0)
    return jnp.dot(h, w2) + b2


def reference_forward(x, raw):
    psi = _ref_ff(x, raw["w1_psi"], raw["b1_psi"], raw["w2_psi"], raw["b2_psi"])
    omg = _ref_ff(x, raw["w1_omg"], raw["b1_omg"], raw["w2_omg"], raw["b2_omg"])
    w = jax.nn.softmax(omg, axis=1)
    pooled = jnp.sum(w * psi, axis=1)
    return _ref_ff(pooled, raw["w1_phi"], raw["b1_phi"],
                   raw["w2_phi"], raw["b2_phi"])


if __name__ == "__main__":
    key = jax.random.PRNGKey(0)

    def _run_case(case_key, B, N, F_IN, H_PSI, P_OUT, H_PHI, F_OUT):
        k_params, k_x = jax.random.split(case_key)
        raw, packed = init_perm_invariant_params(k_params, F_IN, H_PSI, P_OUT,
                                                 H_PHI, F_OUT)
        x = jax.random.normal(k_x, (B, N, F_IN), jnp.float32)
        y = jax.block_until_ready(perm_invariant_forward(x, packed))
        y_ref = reference_forward(x, raw)
        assert y.shape == (B, F_OUT)
        # bf16 matmul operands + approx reciprocal -> loosened tolerance.
        np.testing.assert_allclose(np.asarray(y), np.asarray(y_ref),
                                   rtol=3e-2, atol=3e-2)

    k1, k2 = jax.random.split(key)
    # Small dims -> fused psi/omega path; auto tile_b=8 -> 2-step batch grid.
    _run_case(k1, B=16, N=16, F_IN=8, H_PSI=32, P_OUT=16, H_PHI=32, F_OUT=4)
    # H, P >= 128 -> split (non-zero-padded) per-element path.
    _run_case(k2, B=16, N=8, F_IN=8, H_PSI=128, P_OUT=128, H_PHI=32, F_OUT=4)

    print("KERNEL_OK")
</pallas_src>

<mosaic_0001>
module attributes {stable_mosaic.version = 11 : i64} {
  func.func @_perm_inv_kernel_fused(%arg0: i32, %arg1: memref<128x8xbf16, #tpu.memory_space<vmem>>, %arg2: memref<8x64xbf16, #tpu.memory_space<vmem>>, %arg3: memref<1x64xf32, #tpu.memory_space<vmem>>, %arg4: memref<64x32xbf16, #tpu.memory_space<vmem>>, %arg5: memref<1x32xf32, #tpu.memory_space<vmem>>, %arg6: memref<16x32xbf16, #tpu.memory_space<vmem>>, %arg7: memref<1x32xf32, #tpu.memory_space<vmem>>, %arg8: memref<32x4xbf16, #tpu.memory_space<vmem>>, %arg9: memref<1x4xf32, #tpu.memory_space<vmem>>, %arg10: memref<8x4xf32, #tpu.memory_space<vmem>>) attributes {dimension_semantics = [#tpu.dimension_semantics<parallel>], iteration_bounds = array<i64: 2>, scalar_prefetch = 0 : i64, scratch_operands = 0 : i64, tpu.core_type = #tpu.core_type<tc>, window_params = [{transform_indices = @transform_0, window_bounds = array<i64: 128, 8>}, {pipeline_mode = #tpu.pipeline_mode<synchronous>, transform_indices = @transform_1, window_bounds = array<i64: 8, 64>}, {pipeline_mode = #tpu.pipeline_mode<synchronous>, transform_indices = @transform_2, window_bounds = array<i64: 1, 64>}, {pipeline_mode = #tpu.pipeline_mode<synchronous>, transform_indices = @transform_3, window_bounds = array<i64: 64, 32>}, {pipeline_mode = #tpu.pipeline_mode<synchronous>, transform_indices = @transform_4, window_bounds = array<i64: 1, 32>}, {pipeline_mode = #tpu.pipeline_mode<synchronous>, transform_indices = @transform_5, window_bounds = array<i64: 16, 32>}, {pipeline_mode = #tpu.pipeline_mode<synchronous>, transform_indices = @transform_6, window_bounds = array<i64: 1, 32>}, {pipeline_mode = #tpu.pipeline_mode<synchronous>, transform_indices = @transform_7, window_bounds = array<i64: 32, 4>}, {pipeline_mode = #tpu.pipeline_mode<synchronous>, transform_indices = @transform_8, window_bounds = array<i64: 1, 4>}, {transform_indices = @transform_9, window_bounds = array<i64: 8, 4>}]} {
    %c0 = arith.constant 0 : index
    %c0_0 = arith.constant 0 : index
    %0 = vector.load %arg1[%c0, %c0_0] : memref<128x8xbf16, #tpu.memory_space<vmem>>, vector<128x8xbf16>
    %c0_1 = arith.constant 0 : index
    %c0_2 = arith.constant 0 : index
    %1 = vector.load %arg2[%c0_1, %c0_2] : memref<8x64xbf16, #tpu.memory_space<vmem>>, vector<8x64xbf16>
    %cst = arith.constant dense<0.000000e+00> : vector<128x64xf32>
    %2 = tpu.matmul %0, %1, %cst {dimension_numbers = #tpu.dot_dimension_numbers<[1], [0], [0], [1], [0, 0, 1, 1], [], []>} : vector<128x8xbf16>, vector<8x64xbf16>, vector<128x64xf32> -> vector<128x64xf32>
    %c0_3 = arith.constant 0 : index
    %c0_4 = arith.constant 0 : index
    %3 = vector.load %arg3[%c0_3, %c0_4] : memref<1x64xf32, #tpu.memory_space<vmem>>, vector<1x64xf32>
    %4 = vector.broadcast %3 : vector<1x64xf32> to vector<128x64xf32>
    %5 = arith.addf %2, %4 : vector<128x64xf32>
    %cst_5 = arith.constant 0.000000e+00 : f32
    %6 = vector.broadcast %cst_5 : f32 to vector<128x64xf32>
    %7 = arith.maximumf %5, %6 : vector<128x64xf32>
    %8 = arith.truncf %7 : vector<128x64xf32> to vector<128x64xbf16>
    %c0_6 = arith.constant 0 : index
    %c0_7 = arith.constant 0 : index
    %9 = vector.load %arg4[%c0_6, %c0_7] : memref<64x32xbf16, #tpu.memory_space<vmem>>, vector<64x32xbf16>
    %cst_8 = arith.constant dense<0.000000e+00> : vector<128x32xf32>
    %10 = tpu.matmul %8, %9, %cst_8 {dimension_numbers = #tpu.dot_dimension_numbers<[1], [0], [0], [1], [0, 0, 1, 1], [], []>} : vector<128x64xbf16>, vector<64x32xbf16>, vector<128x32xf32> -> vector<128x32xf32>
    %c0_9 = arith.constant 0 : index
    %c0_10 = arith.constant 0 : index
    %11 = vector.load %arg5[%c0_9, %c0_10] : memref<1x32xf32, #tpu.memory_space<vmem>>, vector<1x32xf32>
    %12 = vector.broadcast %11 : vector<1x32xf32> to vector<128x32xf32>
    %13 = arith.addf %10, %12 : vector<128x32xf32>
    %14 = vector.shape_cast %13 : vector<128x32xf32> to vector<8x16x32xf32>
    %15 = vector.extract_strided_slice %14 {offsets = [0, 0, 0], sizes = [8, 16, 16], strides = [1, 1, 1]} : vector<8x16x32xf32> to vector<8x16x16xf32>
    %16 = vector.extract_strided_slice %14 {offsets = [0, 0, 16], sizes = [8, 16, 16], strides = [1, 1, 1]} : vector<8x16x32xf32> to vector<8x16x16xf32>
    %cst_11 = arith.constant dense<0xFF800000> : vector<8x16xf32>
    %17 = vector.multi_reduction <maximumf>, %16, %cst_11 [1] : vector<8x16x16xf32> to vector<8x16xf32>
    %18 = vector.shape_cast %17 : vector<8x16xf32> to vector<8x1x16xf32>
    %19 = vector.broadcast %18 : vector<8x1x16xf32> to vector<8x16x16xf32>
    %20 = arith.subf %16, %19 : vector<8x16x16xf32>
    %21 = math.exp %20 : vector<8x16x16xf32>
    %cst_12 = arith.constant dense<0.000000e+00> : vector<8x16xf32>
    %22 = vector.multi_reduction <add>, %21, %cst_12 [1] : vector<8x16x16xf32> to vector<8x16xf32>
    %23 = arith.mulf %21, %15 : vector<8x16x16xf32>
    %cst_13 = arith.constant dense<0.000000e+00> : vector<8x16xf32>
    %24 = vector.multi_reduction <add>, %23, %cst_13 [1] : vector<8x16x16xf32> to vector<8x16xf32>
    %25 = tpu.reciprocal %22 {approx = true} : vector<8x16xf32> -> vector<8x16xf32>
    %26 = arith.mulf %24, %25 : vector<8x16xf32>
    %27 = arith.truncf %26 : vector<8x16xf32> to vector<8x16xbf16>
    %c0_14 = arith.constant 0 : index
    %c0_15 = arith.constant 0 : index
    %28 = vector.load %arg6[%c0_14, %c0_15] : memref<16x32xbf16, #tpu.memory_space<vmem>>, vector<16x32xbf16>
    %cst_16 = arith.constant dense<0.000000e+00> : vector<8x32xf32>
    %29 = tpu.matmul %27, %28, %cst_16 {dimension_numbers = #tpu.dot_dimension_numbers<[1], [0], [0], [1], [0, 0, 1, 1], [], []>} : vector<8x16xbf16>, vector<16x32xbf16>, vector<8x32xf32> -> vector<8x32xf32>
    %c0_17 = arith.constant 0 : index
    %c0_18 = arith.constant 0 : index
    %30 = vector.load %arg7[%c0_17, %c0_18] : memref<1x32xf32, #tpu.memory_space<vmem>>, vector<1x32xf32>
    %31 = vector.broadcast %30 : vector<1x32xf32> to vector<8x32xf32>
    %32 = arith.addf %29, %31 : vector<8x32xf32>
    %cst_19 = arith.constant 0.000000e+00 : f32
    %33 = vector.broadcast %cst_19 : f32 to vector<8x32xf32>
    %34 = arith.maximumf %32, %33 : vector<8x32xf32>
    %35 = arith.truncf %34 : vector<8x32xf32> to vector<8x32xbf16>
    %c0_20 = arith.constant 0 : index
    %c0_21 = arith.constant 0 : index
    %36 = vector.load %arg8[%c0_20, %c0_21] : memref<32x4xbf16, #tpu.memory_space<vmem>>, vector<32x4xbf16>
    %cst_22 = arith.constant dense<0.000000e+00> : vector<8x4xf32>
    %37 = tpu.matmul %35, %36, %cst_22 {dimension_numbers = #tpu.dot_dimension_numbers<[1], [0], [0], [1], [0, 0, 1, 1], [], []>} : vector<8x32xbf16>, vector<32x4xbf16>, vector<8x4xf32> -> vector<8x4xf32>
    %c0_23 = arith.constant 0 : index
    %c0_24 = arith.constant 0 : index
    %38 = vector.load %arg9[%c0_23, %c0_24] : memref<1x4xf32, #tpu.memory_space<vmem>>, vector<1x4xf32>
    %39 = vector.broadcast %38 : vector<1x4xf32> to vector<8x4xf32>
    %40 = arith.addf %37, %39 : vector<8x4xf32>
    %c0_25 = arith.constant 0 : index
    %c0_26 = arith.constant 0 : index
    %41 = vector.load %arg10[%c0_25, %c0_26] : memref<8x4xf32, #tpu.memory_space<vmem>>, vector<8x4xf32>
    tpu.vector_store %arg10[%c0_25, %c0_26], %40 {strides = array<i32>} : memref<8x4xf32, #tpu.memory_space<vmem>>, vector<8x4xf32>,
    return
  }
  func.func @transform_0(%arg0: i32) -> (i32, i32) {
    %c0_i32 = arith.constant 0 : i32
    %c0_i32_0 = arith.constant 0 : i32
    return %arg0, %c0_i32 : i32, i32
  }
  func.func @transform_1(%arg0: i32) -> (i32, i32) {
    %c0_i32 = arith.constant 0 : i32
    %c0_i32_0 = arith.constant 0 : i32
    %c0_i32_1 = arith.constant 0 : i32
    return %c0_i32, %c0_i32_0 : i32, i32
  }
  func.func @transform_2(%arg0: i32) -> (i32, i32) {
    %c0_i32 = arith.constant 0 : i32
    %c0_i32_0 = arith.constant 0 : i32
    %c0_i32_1 = arith.constant 0 : i32
    return %c0_i32, %c0_i32_0 : i32, i32
  }
  func.func @transform_3(%arg0: i32) -> (i32, i32) {
    %c0_i32 = arith.constant 0 : i32
    %c0_i32_0 = arith.constant 0 : i32
    %c0_i32_1 = arith.constant 0 : i32
    return %c0_i32, %c0_i32_0 : i32, i32
  }
  func.func @transform_4(%arg0: i32) -> (i32, i32) {
    %c0_i32 = arith.constant 0 : i32
    %c0_i32_0 = arith.constant 0 : i32
    %c0_i32_1 = arith.constant 0 : i32
    return %c0_i32, %c0_i32_0 : i32, i32
  }
  func.func @transform_5(%arg0: i32) -> (i32, i32) {
    %c0_i32 = arith.constant 0 : i32
    %c0_i32_0 = arith.constant 0 : i32
    %c0_i32_1 = arith.constant 0 : i32
    return %c0_i32, %c0_i32_0 : i32, i32
  }
  func.func @transform_6(%arg0: i32) -> (i32, i32) {
    %c0_i32 = arith.constant 0 : i32
    %c0_i32_0 = arith.constant 0 : i32
    %c0_i32_1 = arith.constant 0 : i32
    return %c0_i32, %c0_i32_0 : i32, i32
  }
  func.func @transform_7(%arg0: i32) -> (i32, i32) {
    %c0_i32 = arith.constant 0 : i32
    %c0_i32_0 = arith.constant 0 : i32
    %c0_i32_1 = arith.constant 0 : i32
    return %c0_i32, %c0_i32_0 : i32, i32
  }
  func.func @transform_8(%arg0: i32) -> (i32, i32) {
    %c0_i32 = arith.constant 0 : i32
    %c0_i32_0 = arith.constant 0 : i32
    %c0_i32_1 = arith.constant 0 : i32
    return %c0_i32, %c0_i32_0 : i32, i32
  }
  func.func @transform_9(%arg0: i32) -> (i32, i32) {
    %c0_i32 = arith.constant 0 : i32
    %c0_i32_0 = arith.constant 0 : i32
    return %arg0, %c0_i32 : i32, i32
  }
}

</mosaic_0001>

<bundles_post_ra>
// kernel: perm_invariant_forward.1
= control target key start
LH: loop header
LB: loop body
LE: loop exit
PB: predicated region body
PF: predicated region fallthrough
CT: control target
= control target key end

     0   :  { %s1561_s30 = smov 0   ;;  %s1877_s0 = inlined_call_operand.vmem [shape: bf16[256,8], index: 0, kind: input, shape index: {}]   ;;  %s1878_s1 = inlined_call_operand.vmem [shape: bf16[8,64], index: 1, kind: input, shape index: {}]   ;;  %s1879_s2 = inlined_call_operand.vmem [shape: f32[1,64], index: 2, kind: input, shape index: {}]   ;;  %s1880_s3 = inlined_call_operand.vmem [shape: bf16[64,32], index: 3, kind: input, shape index: {}]   ;;  %s1881_s4 = inlined_call_operand.vmem [shape: f32[1,32], index: 4, kind: input, shape index: {}]   ;;  %s1882_s5 = inlined_call_operand.vmem [shape: bf16[16,32], index: 5, kind: input, shape index: {}]   ;;  %s1883_s6 = inlined_call_operand.vmem [shape: f32[1,32], index: 6, kind: input, shape index: {}]   ;;  %s1884_s7 = inlined_call_operand.vmem [shape: bf16[32,4], index: 7, kind: input, shape index: {}]   ;;  %s1885_s8 = inlined_call_operand.vmem [shape: f32[1,4], index: 8, kind: input, shape index: {}]   ;;  %s1886_s9 = inlined_call_operand.vmem [shape: f32[16,4], index: 9, kind: output, shape index: {}]  }
   0x1 LB: > { %s1567_s10 = sadd.s32 4294967295, %s1505_s30   ;;  %p1298_p0 = scmp.ge.s32.totalorder %s1505_s30, 1  ;;  %s1505_s30 = sphi %s1561_s30, %s19_s30  }
   0x2   : > { %p288_p1 = scmp.lt.s32.totalorder %s1505_s30, 3 }
   0x4   : > { %p289_p2 = pnand %p1298_p0, %p288_p1 }
   0x5   : > { %s1299_s13 = sshll.u32 (!%p289_p2), %s1567_s10, 4  ;;  %s1507_s11 = smov (!%p289_p2), 16  }
   0x6   : > { %292 = sbr.rel (%p289_p2) target bundleno = 1106 (0x452), region = 56  ;;  %p324_p3 = scmp.lt.s32.totalorder (!%p289_p2), %s1299_s13, 31 }
   0x7   : > { %s1510_s14 = smov (!%p289_p2), 112   ;;  %p329_p4 = scmp.lt.s32.totalorder (!%p289_p2), %s1567_s10, 1 }
   0xb   : > { %v350_v0 = vld [vmem:[%s1878_s1] sm:$0xf]  ;;  %vm423_vm0 = vcmask 1043456   ;;  %v1444_v1 = vld [vmem:[%s1880_s3 + $0x18] sm:$0xff]   ;;  %s1888_s13 = smov (!%p324_p3, %s1299_s13), 31  ;;  %vm398_vm1 = vcmask 64512  }
   0xc   : > { %1423 = vmatprep.subr.msk.bf16.mxu0 %vm423_vm0, %v350_v0  ;;  %v425_v2 = vsel %vm423_vm0, %v350_v0, 0  ;;  %1385 = vmatprep.subr.bf16.mxu1 %v1444_v1  ;;  %s1300_s16 = sshll.u32 %s1888_s13, 2  ;;  %v1445_v11 = vld [vmem:[%s1880_s3 + $0x10] sm:$0xff]   ;;  %v1446_v12 = vld [vmem:[%s1880_s3 + $0x8] sm:$0xff]   ;;  %v1447_v13 = vld [vmem:[%s1880_s3] sm:$0xff]   ;;  %vm587_vm2 = vcmask 523264  }
   0xd   : > { %1368 = vmatpush3.bf16.msra.mxu0 %v425_v2  ;;  %1386 = vmatpush3.bf16.msra.mxu1 %v1444_v1  ;;  %s327_s19 = scalar_lea.vmem %s1877_s0, %s1300_s16  ;;  %v1302_v16 = vld [vmem:[%s1879_s2] ss:$0 sm:$0xff]  ;;  %vm709_vm3 = vcmask 261248   ;;  %vm1509_vm4 = vmmov 0   ;;  %vm1103_vm5 = vcmask 1041409   ;;  %vm1105_vm6 = vcmask 1042434  }
   0xe   : > { %v1436_v3 = vld [vmem:[%s327_s19] sm:$0xff]   ;;  %v1437_v4 = vld [vmem:[%s327_s19 + $0x8] sm:$0xff]   ;;  %v1438_v5 = vld [vmem:[%s327_s19 + $0x10] sm:$0xff]   ;;  %1387 = vmatprep.subr.bf16.mxu1 %v1445_v11  ;;  %vm1107_vm7 = vcmask 1043459   ;;  %vm1109_vm8 = vcmask 1044484   ;;  %vm1111_vm9 = vcmask 1045509  }
   0xf   : > { %1369 = vmatprep.mubr.msk.bf16.mxu0 %vm398_vm1, %v1436_v3  ;;  %v1439_v6 = vld [vmem:[%s327_s19 + $0x18] sm:$0xff]   ;;  %v1440_v7 = vld [vmem:[%s327_s19 + $0x20] sm:$0xff]   ;;  %v1441_v8 = vld [vmem:[%s327_s19 + $0x28] sm:$0xff]   ;;  %vm1113_vm10 = vcmask 1046534   ;;  %vm1115_vm11 = vcmask 1047559   ;;  %vm1126_vm12 = vcmask 130048  }
  0x10   : > { %1370 = vmatmul.mubr.msk.bf16.vlgmr.msra.gmra.mxu0 %vm398_vm1, %v1437_v4  ;;  %v1442_v9 = vld [vmem:[%s327_s19 + $0x30] sm:$0xff]   ;;  %v1443_v10 = vld [vmem:[%s327_s19 + $0x38] sm:$0xff]   ;;  %vm1195_vm13 = vcmask 261120   ;;  %s1890_s10 = smov (!%p329_p4, %s1567_s10), 1  ;;  %vm1239_vm14 = vcmask 31744  }
  0x11   : > { %1373 = vmatprep.mubr.msk.bf16.mxu0 %vm398_vm1, %v1438_v5  ;;  %1388 = vmatpush3.bf16.msra.mxu1 %v1445_v11  ;;  %s1301_s21 = sshll.u32 %s1890_s10, 3 }
  0x12   : > { %1389 = vmatprep.subr.bf16.mxu1 %v1446_v12  ;;  %s332_s26 = scalar_lea.vmem %s1886_s9, %s1301_s21 }
  0x15   : > { %1390 = vmatpush3.bf16.msra.mxu1 %v1446_v12 }
  0x16   : > { %1391 = vmatprep.subr.bf16.mxu1 %v1447_v13 }
  0x18   : > { %1374 = vmatmul.mubr.msk.bf16.gmra.mxu0 %vm398_vm1, %v1439_v6 }
  0x19   : > { %1377 = vmatprep.mubr.msk.bf16.mxu0 %vm398_vm1, %v1440_v7  ;;  %1392 = vmatpush3.bf16.msra.mxu1 %v1447_v13  ;;  %v1612_v7 = vld [vmem:[%s1881_s4] ss:$0 sm:$0xff] }
  0x20   : > { %1378 = vmatmul.mubr.msk.bf16.gmra.mxu0 %vm398_vm1, %v1441_v8 }
  0x21   : > { %1381 = vmatprep.mubr.msk.bf16.mxu0 %vm398_vm1, %v1442_v9 }
  0x28   : > { %1382 = vmatmul.mubr.msk.bf16.gmra.mxu0 %vm398_vm1, %v1443_v10 }
  0xd0   : > { %v1371_v14 = vpop.f32.mrf.mxu0 }
  0xd1   : > { %v470_v20 = vadd.f32 %v1371_v14, %v1302_v16 }
  0xd2   : > { %v461_v15 = vpop.f32.mrf.mxu0 }
  0xd3   : > { %v462_v18 = vadd.f32 %v1302_v16, %v461_v15  ;;  %v526_v27 = vmax.f32 %v470_v20, 0.0 }
  0xd4   : > { %v1372_v17 = vpop.f32.mrf.mxu0 }
  0xd5   : > { %v473_v19 = vadd.f32 %v1372_v17, %v1302_v16  ;;  %v524_v25 = vmax.f32 %v462_v18, 0.0 }
  0xd6   : > { %v464_v21 = vpop.f32.mrf.mxu0 }
  0xd7   : > { %v465_v22 = vadd.f32 %v1302_v16, %v464_v21  ;;  %v527_v23 = vmax.f32 %v473_v19, 0.0 }
  0xd8   : > { %v1375_v24 = vpop.f32.mrf.mxu0 }
  0xd9   : > { %v525_v26 = vmax.f32 %v465_v22, 0.0  ;;  %v541_v30 = vpack.c.bf16 %v527_v23, %v526_v27  ;;  %v486_v34 = vadd.f32 %v1375_v24, %v1302_v16 }
  0xda   : > { %v477_v28 = vpop.f32.mrf.mxu0 }
  0xdb   : > { %v540_v29 = vpack.c.bf16 %v525_v26, %v524_v25  ;;  %v478_v32 = vadd.f32 %v1302_v16, %v477_v28  ;;  %v530_v41 = vmax.f32 %v486_v34, 0.0 }
  0xdc   : > { %v1376_v31 = vpop.f32.mrf.mxu0 }
  0xdd   : > { %v489_v33 = vadd.f32 %v1376_v31, %v1302_v16  ;;  %1393 = vmatprep.mubr.msk.bf16.mxu1 %vm587_vm2, %v540_v29  ;;  %v528_v39 = vmax.f32 %v478_v32, 0.0 }
  0xde   : > { %v480_v35 = vpop.f32.mrf.mxu0  ;;  %1394 = vmatmul.mubr.msk.bf16.vlgmr.msra.gmra.mxu1 %vm587_vm2, %v541_v30 }
  0xdf   : > { %v481_v36 = vadd.f32 %v1302_v16, %v480_v35  ;;  %v531_v37 = vmax.f32 %v489_v33, 0.0 }
  0xe0   : > { %v1379_v38 = vpop.f32.mrf.mxu0 }
  0xe1   : > { %v529_v40 = vmax.f32 %v481_v36, 0.0  ;;  %v543_v44 = vpack.c.bf16 %v531_v37, %v530_v41  ;;  %v502_v48 = vadd.f32 %v1379_v38, %v1302_v16 }
  0xe2   : > { %v493_v42 = vpop.f32.mrf.mxu0 }
  0xe3   : > { %v542_v43 = vpack.c.bf16 %v529_v40, %v528_v39  ;;  %v494_v46 = vadd.f32 %v1302_v16, %v493_v42  ;;  %v534_v55 = vmax.f32 %v502_v48, 0.0 }
  0xe4   : > { %v1380_v45 = vpop.f32.mrf.mxu0 }
  0xe5   : > { %v505_v47 = vadd.f32 %v1380_v45, %v1302_v16  ;;  %1397 = vmatprep.mubr.msk.bf16.mxu1 %vm587_vm2, %v542_v43  ;;  %v532_v53 = vmax.f32 %v494_v46, 0.0 }
  0xe6   : > { %v496_v49 = vpop.f32.mrf.mxu0  ;;  %1398 = vmatmul.mubr.msk.bf16.gmra.mxu1 %vm587_vm2, %v543_v44 }
  0xe7   : > { %v497_v50 = vadd.f32 %v1302_v16, %v496_v49  ;;  %v535_v51 = vmax.f32 %v505_v47, 0.0 }
  0xe8   : > { %v1383_v52 = vpop.f32.mrf.mxu0 }
  0xe9   : > { %v533_v54 = vmax.f32 %v497_v50, 0.0  ;;  %v545_v58 = vpack.c.bf16 %v535_v51, %v534_v55  ;;  %v518_v62 = vadd.f32 %v1383_v52, %v1302_v16 }
  0xea   : > { %v509_v56 = vpop.f32.mrf.mxu0 }
  0xeb   : > { %v544_v57 = vpack.c.bf16 %v533_v54, %v532_v53  ;;  %v510_v60 = vadd.f32 %v1302_v16, %v509_v56  ;;  %v538_v4 = vmax.f32 %v518_v62, 0.0 }
  0xec   : > { %v1384_v59 = vpop.f32.mrf.mxu0 }
  0xed   : > { %v521_v61 = vadd.f32 %v1384_v59, %v1302_v16  ;;  %1401 = vmatprep.mubr.msk.bf16.mxu1 %vm587_vm2, %v544_v57  ;;  %v536_v2 = vmax.f32 %v510_v60, 0.0 }
  0xee   : > { %v512_v63 = vpop.f32.mrf.mxu0  ;;  %1402 = vmatmul.mubr.msk.bf16.gmra.mxu1 %vm587_vm2, %v545_v58 }
  0xef   : > { %v513_v0 = vadd.f32 %v1302_v16, %v512_v63  ;;  %v539_v1 = vmax.f32 %v521_v61, 0.0 }
  0xf1   : > { %v537_v3 = vmax.f32 %v513_v0, 0.0  ;;  %v547_v6 = vpack.c.bf16 %v539_v1, %v538_v4 }
  0xf3   : > { %v546_v5 = vpack.c.bf16 %v537_v3, %v536_v2 }
  0xf5   : > { %1405 = vmatprep.mubr.msk.bf16.mxu1 %vm587_vm2, %v546_v5 }
  0xf6   : > { %1406 = vmatmul.mubr.msk.bf16.gmra.mxu1 %vm587_vm2, %v547_v6 }
 0x19e   : > { %v1395_v8 = vpop.f32.mrf.mxu1 }
 0x19f   : > { %v1615_v9 = vadd.f32 %v1395_v8, %v1612_v7 }
 0x1a0   : > { %v646_v10 = vpop.f32.mrf.mxu1 }
 0x1a1   : > { %v1618_v11 = vadd.f32 %v1612_v7, %v646_v10  ;;  %922 = vrot.lane.b32.xlu1 %v1615_v9, %s1507_s11  ;;  %v719_v15 = vsel %vm709_vm3, %v1615_v9, -inf }
 0x1a2   : > { %v1396_v12 = vpop.f32.mrf.mxu1 }
 0x1a3   : > { %v1623_v13 = vadd.f32 %v1396_v12, %v1612_v7  ;;  %918 = vrot.lane.b32.xlu0 %v1618_v11, %s1507_s11  ;;  %v710_v20 = vsel %vm709_vm3, %v1618_v11, -inf }
 0x1a4   : > { %v649_v14 = vpop.f32.mrf.mxu1 }
 0x1a5   : > { %v720_v16 = vsel %vm709_vm3, %v1623_v13, -inf  ;;  %v1632_v17 = vadd.f32 %v1612_v7, %v649_v14  ;;  %924 = vrot.lane.b32.xlu1 %v1623_v13, %s1507_s11 }
 0x1a6   : > { %v721_v18 = vmax.f32 %v719_v15, %v720_v16  ;;  %v1399_v19 = vpop.f32.mrf.mxu1 }
 0x1a7   : > { %v711_v21 = vsel %vm709_vm3, %v1632_v17, -inf  ;;  %920 = vrot.lane.b32.xlu0 %v1632_v17, %s1507_s11  ;;  %v1643_v25 = vadd.f32 %v1399_v19, %v1612_v7 }
 0x1a8   : > { %v722_v22 = vrot.slane %v721_v18, 4  ;;  %v712_v23 = vmax.f32 %v710_v20, %v711_v21  ;;  %v662_v24 = vpop.f32.mrf.mxu1 }
 0x1a9   : > { %v1646_v29 = vadd.f32 %v1612_v7, %v662_v24  ;;  %v737_v34 = vsel %vm709_vm3, %v1643_v25, -inf }
 0x1aa   : > { %v723_v26 = vmax.f32 %v721_v18, %v722_v22  ;;  %v713_v27 = vrot.slane %v712_v23, 4  ;;  %v1400_v28 = vpop.f32.mrf.mxu1 }
 0x1ab   : > { %v1649_v30 = vadd.f32 %v1400_v28, %v1612_v7  ;;  %930 = vrot.lane.b32.xlu0 %v1643_v25, %s1507_s11  ;;  %v728_v41 = vsel %vm709_vm3, %v1646_v29, -inf }
 0x1ac   : > { %v724_v31 = vrot.slane %v723_v26, 2  ;;  %v714_v32 = vmax.f32 %v712_v23, %v713_v27  ;;  %v665_v33 = vpop.f32.mrf.mxu1 }
 0x1ad   : > { %v738_v35 = vsel %vm709_vm3, %v1649_v30, -inf  ;;  %v1658_v36 = vadd.f32 %v1612_v7, %v665_v33  ;;  %932 = vrot.lane.b32.xlu1 %v1649_v30, %s1507_s11 }
 0x1ae   : > { %v725_v37 = vmax.f32 %v723_v26, %v724_v31  ;;  %v715_v38 = vrot.slane %v714_v32, 2  ;;  %v739_v39 = vmax.f32 %v737_v34, %v738_v35  ;;  %v1403_v40 = vpop.f32.mrf.mxu1 }
 0x1af   : > { %v729_v42 = vsel %vm709_vm3, %v1658_v36, -inf  ;;  %v1667_v43 = vadd.f32 %v1403_v40, %v1612_v7  ;;  %926 = vrot.lane.b32.xlu0 %v1646_v29, %s1507_s11 }
 0x1b0   : > { %v726_v44 = vrot.slane %v725_v37, 1  ;;  %v716_v45 = vmax.f32 %v714_v32, %v715_v38  ;;  %v740_v46 = vrot.slane %v739_v39, 4  ;;  %v730_v47 = vmax.f32 %v728_v41, %v729_v42  ;;  %v678_v48 = vpop.f32.mrf.mxu1 }
 0x1b1   : > { %v1672_v49 = vadd.f32 %v1612_v7, %v678_v48  ;;  %928 = vrot.lane.b32.xlu1 %v1658_v36, %s1507_s11  ;;  %v755_v55 = vsel %vm709_vm3, %v1667_v43, -inf }
 0x1b2   : > { %v727_v50 = vmax.f32 %v725_v37, %v726_v44  ;;  %v717_v51 = vrot.slane %v716_v45, 1  ;;  %v741_v52 = vmax.f32 %v739_v39, %v740_v46  ;;  %v731_v53 = vrot.slane %v730_v47, 4  ;;  %v1404_v54 = vpop.f32.mrf.mxu1 }
 0x1b3   : > { %v1679_v56 = vadd.f32 %v1404_v54, %v1612_v7  ;;  %938 = vrot.lane.b32.xlu0 %v1667_v43, %s1507_s11  ;;  %v746_v63 = vsel %vm709_vm3, %v1672_v49, -inf }
 0x1b4   : > { %v784_v57 = vsub.f32 %v1615_v9, %v727_v50  ;;  %v785_v58 = vsub.f32 %v1623_v13, %v727_v50  ;;  %v718_v59 = vmax.f32 %v716_v45, %v717_v51  ;;  %v742_v60 = vrot.slane %v741_v52, 2  ;;  %v681_v61 = vpop.f32.mrf.mxu1 }
 0x1b5   : > { %v732_v62 = vmax.f32 %v730_v47, %v731_v53  ;;  %v756_v0 = vsel %vm709_vm3, %v1679_v56, -inf  ;;  %v1690_v1 = vadd.f32 %v1612_v7, %v681_v61  ;;  %940 = vrot.lane.b32.xlu1 %v1679_v56, %s1507_s11 }
 0x1b6   : > { %v802_v2 = vmul.f32 1.442695, %v784_v57  ;;  %v804_v3 = vmul.f32 1.442695, %v785_v58  ;;  %v782_v4 = vsub.f32 %v1618_v11, %v718_v59  ;;  %v783_v5 = vsub.f32 %v1632_v17, %v718_v59  ;;  %v1407_v6 = vpop.f32.mrf.mxu1 }
 0x1b7   : > { %v743_v8 = vmax.f32 %v741_v52, %v742_v60  ;;  %v733_v9 = vrot.slane %v732_v62, 2  ;;  %v757_v10 = vmax.f32 %v755_v55, %v756_v0  ;;  %v747_v12 = vsel %vm709_vm3, %v1690_v1, -inf  ;;  %934 = vrot.lane.b32.xlu0 %v1672_v49, %s1507_s11 }
 0x1b8   : > { %1451 = vpow2.f32 %v802_v2  ;;  %v798_v13 = vmul.f32 1.442695, %v782_v4  ;;  %v800_v14 = vmul.f32 1.442695, %v783_v5  ;;  %v748_v15 = vmax.f32 %v746_v63, %v747_v12  ;;  %v694_v16 = vpop.f32.mrf.mxu1 }
 0x1b9   : > { %1453 = vpow2.f32 %v804_v3  ;;  %v744_v18 = vrot.slane %v743_v8, 1  ;;  %v734_v11 = vmax.f32 %v732_v62, %v733_v9  ;;  %v758_v19 = vrot.slane %v757_v10, 4  ;;  %936 = vrot.lane.b32.xlu1 %v1690_v1, %s1507_s11 }
 0x1ba   : > { %1455 = vpow2.f32 %v798_v13  ;;  %v749_v17 = vrot.slane %v748_v15, 4  ;;  %v1703_v20 = vadd.f32 %v1407_v6, %v1612_v7  ;;  %v1706_v21 = vadd.f32 %v1612_v7, %v694_v16  ;;  %v1408_v22 = vpop.f32.mrf.mxu1 }
 0x1bb   : > { %1457 = vpow2.f32 %v800_v14  ;;  %v745_v23 = vmax.f32 %v743_v8, %v744_v18  ;;  %v735_v24 = vrot.slane %v734_v11, 1  ;;  %v759_v26 = vmax.f32 %v757_v10, %v758_v19 }
 0x1bc   : > { %v750_v27 = vmax.f32 %v748_v15, %v749_v17  ;;  %v773_v28 = vsel %vm709_vm3, %v1703_v20, -inf  ;;  %v1711_v31 = vadd.f32 %v1408_v22, %v1612_v7  ;;  %942 = vrot.lane.b32.xlu0 %v1706_v21, %s1507_s11  ;;  %v697_v32 = vpop.f32.mrf.mxu1  ;;  %v764_v39 = vsel %vm709_vm3, %v1706_v21, -inf }
 0x1bd   : > { %v788_v33 = vsub.f32 %v1643_v25, %v745_v23  ;;  %v789_v34 = vsub.f32 %v1649_v30, %v745_v23  ;;  %v736_v35 = vmax.f32 %v734_v11, %v735_v24  ;;  %v760_v37 = vrot.slane %v759_v26, 2 }
 0x1be   : > { %v751_v38 = vrot.slane %v750_v27, 2  ;;  %v774_v40 = vsel %vm709_vm3, %v1711_v31, -inf  ;;  %v1722_v41 = vadd.f32 %v1612_v7, %v697_v32 }
 0x1bf   : > { %v810_v42 = vmul.f32 1.442695, %v788_v33  ;;  %v812_v44 = vmul.f32 1.442695, %v789_v34  ;;  %v786_v45 = vsub.f32 %v1646_v29, %v736_v35  ;;  %v787_v25 = vsub.f32 %v1658_v36, %v736_v35 }
 0x1c0   : > { %v761_v46 = vmax.f32 %v759_v26, %v760_v37  ;;  %v752_v30 = vmax.f32 %v750_v27, %v751_v38  ;;  %v775_v47 = vmax.f32 %v773_v28, %v774_v40  ;;  %v765_v48 = vsel %vm709_vm3, %v1722_v41, -inf  ;;  %944 = vrot.lane.b32.xlu1 %v1722_v41, %s1507_s11  ;;  %946 = vrot.lane.b32.xlu0 %v1703_v20, %s1507_s11 }
 0x1c1   : > { %1459 = vpow2.f32 %v810_v42  ;;  %v806_v7 = vmul.f32 1.442695, %v786_v45  ;;  %v808_v50 = vmul.f32 1.442695, %v787_v25  ;;  %v766_v51 = vmax.f32 %v764_v39, %v765_v48 }
 0x1c2   : > { %1461 = vpow2.f32 %v812_v44  ;;  %v762_v29 = vrot.slane %v761_v46, 1  ;;  %v753_v52 = vrot.slane %v752_v30, 1  ;;  %v776_v36 = vrot.slane %v775_v47, 4 }
 0x1c3   : > { %1463 = vpow2.f32 %v806_v7  ;;  %v767_v53 = vrot.slane %v766_v51, 4  ;;  %v1508_v44 = vmov 0.0  }
 0x1c4   : > { %1465 = vpow2.f32 %v808_v50  ;;  %v763_v54 = vmax.f32 %v761_v46, %v762_v29  ;;  %v754_v55 = vmax.f32 %v752_v30, %v753_v52  ;;  %v777_v57 = vmax.f32 %v775_v47, %v776_v36  ;;  %948 = vrot.lane.b32.xlu1 %v1711_v31, %s1507_s11  ;;  %1409 = vmatprep.subr.bf16.mxu0 %v1508_v44 }
 0x1c5   : > { %v1734_v58 = vpop.eup %1451  ;;  %v768_v59 = vmax.f32 %v766_v51, %v767_v53  ;;  %1411 = vmatprep.mubr.msk.bf16.mxu0 %vm1509_vm4, %v1508_v44 }
 0x1c6   : > { %v1736_v60 = vpop.eup %1453  ;;  %v839_v61 = vsel %vm709_vm3, %v1734_v58, 0.0  ;;  %v792_v62 = vsub.f32 %v1667_v43, %v763_v54  ;;  %v793_v63 = vsub.f32 %v1679_v56, %v763_v54  ;;  %v790_v0 = vsub.f32 %v1672_v49, %v754_v55 }
 0x1c7   : > { %v1743_v2 = vpop.eup %1455  ;;  %v840_v3 = vsel %vm709_vm3, %v1736_v60, 0.0  ;;  %v791_v4 = vsub.f32 %v1690_v1, %v754_v55  ;;  %v778_v5 = vrot.slane %v777_v57, 2  ;;  %v769_v6 = vrot.slane %v768_v59, 2 }
 0x1c8   : > { %v1748_v8 = vpop.eup %1457  ;;  %v1750_v9 = vadd.f32 %v840_v3, %v839_v61  ;;  %v830_v43 = vsel %vm709_vm3, %v1743_v2, 0.0  ;;  %v818_v10 = vmul.f32 1.442695, %v792_v62  ;;  %v820_v56 = vmul.f32 1.442695, %v793_v63 }
 0x1c9   : > { %v831_v49 = vsel %vm709_vm3, %v1748_v8, 0.0  ;;  %v814_v12 = vmul.f32 1.442695, %v790_v0  ;;  %v816_v13 = vmul.f32 1.442695, %v791_v4  ;;  %v779_v14 = vmax.f32 %v777_v57, %v778_v5 }
 0x1ca   : > { %v832_v15 = vadd.f32 %v831_v49, %v830_v43  ;;  %1467 = vpow2.f32 %v818_v10  ;;  %v770_v1 = vmax.f32 %v768_v59, %v769_v6  ;;  %v842_v63 = vrot.slane %v1750_v9, 4 }
 0x1cb   : > { %1469 = vpow2.f32 %v820_v56  ;;  %v780_v16 = vrot.slane %v779_v14, 1 }
 0x1cc   : > { %1471 = vpow2.f32 %v814_v12  ;;  %v771_v18 = vrot.slane %v770_v1, 1  ;;  %v833_v0 = vrot.slane %v832_v15, 4  ;;  %v843_v3 = vadd.f32 %v842_v63, %v1750_v9 }
 0x1cd   : > { %1473 = vpow2.f32 %v816_v13  ;;  %v781_v11 = vmax.f32 %v779_v14, %v780_v16 }
 0x1ce   : > { %v1756_v19 = vpop.eup %1459  ;;  %v772_v17 = vmax.f32 %v770_v1, %v771_v18  ;;  %v834_v4 = vadd.f32 %v833_v0, %v832_v15  ;;  %v844_v5 = vrot.slane %v843_v3, 2 }
 0x1cf   : > { %v1758_v22 = vpop.eup %1461  ;;  %v857_v23 = vsel %vm709_vm3, %v1756_v19, 0.0  ;;  %v796_v24 = vsub.f32 %v1703_v20, %v781_v11  ;;  %v797_v26 = vsub.f32 %v1711_v31, %v781_v11 }
 0x1d0   : > { %v1764_v27 = vpop.eup %1463  ;;  %v858_v28 = vsel %vm709_vm3, %v1758_v22, 0.0  ;;  %v794_v32 = vsub.f32 %v1706_v21, %v772_v17  ;;  %v795_v31 = vsub.f32 %v1722_v41, %v772_v17  ;;  %v1448_v21 = vld [vmem:[%s1882_s5] sm:$0xff]   ;;  %v835_v43 = vrot.slane %v834_v4, 2 }
 0x1d1   : > { %v1769_v33 = vpop.eup %1465  ;;  %v859_v34 = vadd.f32 %v858_v28, %v857_v23  ;;  %v848_v35 = vsel %vm709_vm3, %v1764_v27, 0.0  ;;  %v826_v37 = vmul.f32 1.442695, %v796_v24  ;;  %v828_v38 = vmul.f32 1.442695, %v797_v26  ;;  %1410 = vmatpush3.bf16.msra.mxu0 %v1448_v21 }
 0x1d2   : > { %v849_v20 = vsel %vm709_vm3, %v1769_v33, 0.0  ;;  %v822_v40 = vmul.f32 1.442695, %v794_v32  ;;  %v824_v42 = vmul.f32 1.442695, %v795_v31  ;;  %1415 = vmatprep.subr.bf16.mxu0 %v1508_v44  ;;  %v845_v56 = vadd.f32 %v844_v5, %v843_v3 }
 0x1d3   : > { %v850_v39 = vadd.f32 %v849_v20, %v848_v35  ;;  %1475 = vpow2.f32 %v826_v37  ;;  %v860_v6 = vrot.slane %v859_v34, 4  ;;  %v836_v12 = vadd.f32 %v835_v43, %v834_v4 }
 0x1d4   : > { %1477 = vpow2.f32 %v828_v38  ;;  %v846_v1 = vrot.slane %v845_v56, 1 }
 0x1d5   : > { %1479 = vpow2.f32 %v822_v40  ;;  %v851_v10 = vrot.slane %v850_v39, 4  ;;  %v861_v49 = vadd.f32 %v860_v6, %v859_v34  ;;  %v837_v17 = vrot.slane %v836_v12, 1 }
 0x1d6   : > { %1481 = vpow2.f32 %v824_v42  ;;  %v847_v32 = vadd.f32 %v846_v1, %v845_v56 }
 0x1d7   : > { %v1780_v45 = vpop.eup %1467  ;;  %v852_v13 = vadd.f32 %v851_v10, %v850_v39  ;;  %v862_v16 = vrot.slane %v861_v49, 2  ;;  %v838_v31 = vadd.f32 %v837_v17, %v836_v12 }
 0x1d8   : > { %v1784_v41 = vpop.eup %1469  ;;  %v875_v25 = vsel %vm709_vm3, %v1780_v45, 0.0  ;;  %1483 = vrcp.f32 %v847_v32 }
 0x1d9   : > { %v1789_v46 = vpop.eup %1471  ;;  %v876_v30 = vsel %vm709_vm3, %v1784_v41, 0.0  ;;  %v853_v23 = vrot.slane %v852_v13, 2  ;;  %v863_v15 = vadd.f32 %v862_v16, %v861_v49  ;;  %1485 = vrcp.f32 %v838_v31 }
 0x1da   : > { %v1793_v47 = vpop.eup %1473  ;;  %v877_v48 = vadd.f32 %v876_v30, %v875_v25  ;;  %v866_v7 = vsel %vm709_vm3, %v1789_v46, 0.0 }
 0x1db   : > { %v867_v50 = vsel %vm709_vm3, %v1793_v47, 0.0  ;;  %v854_v38 = vadd.f32 %v853_v23, %v852_v13  ;;  %v864_v25 = vrot.slane %v863_v15, 1 }
 0x1dc   : > { %v868_v51 = vadd.f32 %v867_v50, %v866_v7  ;;  %v878_v14 = vrot.slane %v877_v48, 4 }
 0x1dd   : > { %v865_v0 = vadd.f32 %v864_v25, %v863_v15 }
 0x1de   : > { %v869_v11 = vrot.slane %v868_v51, 4  ;;  %v879_v26 = vadd.f32 %v878_v14, %v877_v48 }
 0x1df   : > { %1487 = vrcp.f32 %v865_v0 }
 0x1e0   : > { %v1799_v29 = vpop.eup %1475  ;;  %v870_v35 = vadd.f32 %v869_v11, %v868_v51  ;;  %v880_v39 = vrot.slane %v879_v26, 2 }
 0x1e1   : > { %v1801_v52 = vpop.eup %1477  ;;  %v893_v36 = vsel %vm709_vm3, %v1799_v29, 0.0 }
 0x1e2   : > { %v1805_v53 = vpop.eup %1479  ;;  %v894_v54 = vsel %vm709_vm3, %v1801_v52, 0.0  ;;  %v871_v30 = vrot.slane %v870_v35, 2 }
 0x1e3   : > { %v1809_v55 = vpop.eup %1481  ;;  %v1811_v57 = vadd.f32 %v894_v54, %v893_v36  ;;  %v884_v59 = vsel %vm709_vm3, %v1805_v53, 0.0  ;;  %v881_v54 = vadd.f32 %v880_v39, %v879_v26 }
 0x1e4   : > { %v885_v61 = vsel %vm709_vm3, %v1809_v55, 0.0  ;;  %v872_v3 = vadd.f32 %v871_v30, %v870_v35 }
 0x1e5   : > { %v886_v62 = vadd.f32 %v885_v61, %v884_v59  ;;  %v896_v4 = vrot.slane %v1811_v57, 4  ;;  %v882_v12 = vrot.slane %v881_v54, 1  ;;  %v1484_v31 = vpop.eup %1483 }
 0x1e6   : > { %v873_v17 = vrot.slane %v872_v3, 1 }
 0x1e7   : > { %v887_v48 = vrot.slane %v886_v62, 4  ;;  %v883_v35 = vadd.f32 %v882_v12, %v881_v54 }
 0x1e9   : > { %v888_v5 = vadd.f32 %v887_v48, %v886_v62  ;;  %v897_v62 = vadd.f32 %v896_v4, %v1811_v57 }
 0x213   : > { %v923_v18 = vpop.permute.xlu1 %922 }
 0x214   : > { %v968_v9 = vmul.f32 %v1734_v58, %v923_v18 }
 0x215   : > { %v919_v24 = vpop.permute.xlu0 %918 }
 0x216   : > { %v966_v37 = vmul.f32 %v1743_v2, %v919_v24  ;;  %v991_v40 = vsel %vm709_vm3, %v968_v9, 0.0 }
 0x217   : > { %v925_v28 = vpop.permute.xlu1 %924 }
 0x218   : > { %v969_v34 = vmul.f32 %v1736_v60, %v925_v28  ;;  %v982_v7 = vsel %vm709_vm3, %v966_v37, 0.0  ;;  %v855_v60 = vrot.slane %v854_v38, 1 }
 0x219   : > { %v921_v20 = vpop.permute.xlu0 %920 }
 0x21a   : > { %v992_v21 = vsel %vm709_vm3, %v969_v34, 0.0  ;;  %v967_v42 = vmul.f32 %v1748_v8, %v921_v20  ;;  %v856_v49 = vadd.f32 %v855_v60, %v854_v38 }
 0x21b   : > { %v993_v58 = vadd.f32 %v992_v21, %v991_v40  ;;  %v874_v21 = vadd.f32 %v873_v17, %v872_v3 }
 0x21c   : > { %v983_v2 = vsel %vm709_vm3, %v967_v42, 0.0  ;;  %1489 = vrcp.f32 %v856_v49 }
 0x21d   : > { %v994_v50 = vrot.slane %v993_v58, 4  ;;  %v984_v51 = vadd.f32 %v983_v2, %v982_v7  ;;  %v931_v36 = vpop.permute.xlu0 %930  ;;  %v1486_v7 = vpop.eup %1485  ;;  %1491 = vrcp.f32 %v883_v35 }
 0x21e   : > { %v972_v59 = vmul.f32 %v1756_v19, %v931_v36  ;;  %1493 = vrcp.f32 %v874_v21 }
 0x21f   : > { %v995_v61 = vadd.f32 %v994_v50, %v993_v58  ;;  %v985_v63 = vrot.slane %v984_v51, 4  ;;  %v933_v8 = vpop.permute.xlu1 %932 }
 0x220   : > { %v973_v6 = vmul.f32 %v1758_v22, %v933_v8  ;;  %v1009_v13 = vsel %vm709_vm3, %v972_v59, 0.0  ;;  %v889_v22 = vrot.slane %v888_v5, 2 }
 0x221   : > { %v996_v43 = vrot.slane %v995_v61, 2  ;;  %v986_v10 = vadd.f32 %v985_v63, %v984_v51  ;;  %v927_v56 = vpop.permute.xlu0 %926 }
 0x222   : > { %v1010_v14 = vsel %vm709_vm3, %v973_v6, 0.0  ;;  %v970_v19 = vmul.f32 %v1764_v27, %v927_v56  ;;  %v890_v39 = vadd.f32 %v889_v22, %v888_v5 }
 0x223   : > { %v997_v1 = vadd.f32 %v996_v43, %v995_v61  ;;  %v987_v16 = vrot.slane %v986_v10, 2  ;;  %v1011_v18 = vadd.f32 %v1010_v14, %v1009_v13  ;;  %v929_v11 = vpop.permute.xlu1 %928  ;;  %v1488_v14 = vpop.eup %1487 }
 0x224   : > { %v971_v23 = vmul.f32 %v1769_v33, %v929_v11  ;;  %v1000_v28 = vsel %vm709_vm3, %v970_v19, 0.0  ;;  %v898_v33 = vrot.slane %v897_v62, 2  ;;  %v891_v8 = vrot.slane %v890_v39, 1 }
 0x225   : > { %v998_v24 = vrot.slane %v997_v1, 1  ;;  %v988_v26 = vadd.f32 %v987_v16, %v986_v10  ;;  %v1012_v9 = vrot.slane %v1011_v18, 4  ;;  %v939_v15 = vpop.permute.xlu0 %938 }
 0x226   : > { %v1001_v27 = vsel %vm709_vm3, %v971_v23, 0.0  ;;  %v976_v32 = vmul.f32 %v1780_v45, %v939_v15  ;;  %v892_v23 = vadd.f32 %v891_v8, %v890_v39 }
 0x227   : > { %v999_v37 = vadd.f32 %v998_v24, %v997_v1  ;;  %v989_v34 = vrot.slane %v988_v26, 1  ;;  %v1013_v38 = vadd.f32 %v1012_v9, %v1011_v18  ;;  %v1002_v57 = vadd.f32 %v1001_v27, %v1000_v28  ;;  %v941_v20 = vpop.permute.xlu1 %940 }
 0x228   : > { %v977_v40 = vmul.f32 %v1784_v41, %v941_v20  ;;  %v1027_v45 = vsel %vm709_vm3, %v976_v32, 0.0  ;;  %v899_v41 = vadd.f32 %v898_v33, %v897_v62  ;;  %1495 = vrcp.f32 %v892_v23  ;;  %v1449_v23 = vld [vmem:[%s1884_s7 + $0x8] sm:$0xff]  }
 0x229   : > { %v1063_v42 = vmul.f32 %v1484_v31, %v999_v37  ;;  %v990_v25 = vadd.f32 %v989_v34, %v988_v26  ;;  %v1014_v58 = vrot.slane %v1013_v38, 2  ;;  %v1003_v30 = vrot.slane %v1002_v57, 4  ;;  %v935_v48 = vpop.permute.xlu0 %934  ;;  %v1490_v62 = vpop.eup %1489 }
 0x22a   : > { %v1028_v2 = vsel %vm709_vm3, %v977_v40, 0.0  ;;  %v974_v60 = vmul.f32 %v1789_v46, %v935_v48  ;;  %v1492_v39 = vpop.eup %1491 }
 0x22b   : > { %v1071_v50 = vpack.c.bf16 %v1063_v42, %v1063_v42  ;;  %v1062_v51 = vmul.f32 %v1486_v7, %v990_v25  ;;  %v1015_v36 = vadd.f32 %v1014_v58, %v1013_v38  ;;  %v1004_v54 = vadd.f32 %v1003_v30, %v1002_v57  ;;  %v937_v59 = vpop.permute.xlu1 %936  ;;  %v1494_v58 = vpop.eup %1493 }
 0x22c   : > { %v1029_v61 = vadd.f32 %v1028_v2, %v1027_v45  ;;  %v975_v63 = vmul.f32 %v1793_v47, %v937_v59  ;;  %v1018_v43 = vsel %vm709_vm3, %v974_v60, 0.0  ;;  %v900_v47 = vrot.slane %v899_v41, 1 }
 0x22d   : > { %v1070_v0 = vpack.c.bf16 %v1062_v51, %v1062_v51  ;;  %v1016_v3 = vrot.slane %v1015_v36, 1  ;;  %v1005_v4 = vrot.slane %v1004_v54, 2  ;;  %v1096_v5 = vunpack.c.l.b16 %v1071_v50 }
 0x22e   : > { %v1030_v6 = vrot.slane %v1029_v61, 4  ;;  %v1019_v46 = vsel %vm709_vm3, %v975_v63, 0.0  ;;  %v943_v10 = vpop.permute.xlu0 %942  ;;  %v901_v35 = vadd.f32 %v900_v47, %v899_v41 }
 0x22f   : > { %v1095_v56 = vunpack.c.l.b16 %v1070_v0  ;;  %v1017_v49 = vadd.f32 %v1016_v3, %v1015_v36  ;;  %v1006_v12 = vadd.f32 %v1005_v4, %v1004_v54  ;;  %v1020_v13 = vadd.f32 %v1019_v46, %v1018_v43 }
 0x230   : > { %v1031_v19 = vadd.f32 %v1030_v6, %v1029_v61  ;;  %v978_v1 = vmul.f32 %v1805_v53, %v943_v10  ;;  %1497 = vrcp.f32 %v901_v35 }
 0x231   : > { %v1104_v16 = vsel %vm1103_vm5, %v1096_v5, %v1095_v56  ;;  %v1065_v18 = vmul.f32 %v1488_v14, %v1017_v49  ;;  %v1007_v11 = vrot.slane %v1006_v12, 1  ;;  %v1021_v17 = vrot.slane %v1020_v13, 4 }
 0x232   : > { %v1032_v22 = vrot.slane %v1031_v19, 2  ;;  %v945_v24 = vpop.permute.xlu1 %944  ;;  %v947_v26 = vpop.permute.xlu0 %946  ;;  %v1036_v32 = vsel %vm709_vm3, %v978_v1, 0.0 }
 0x233   : > { %v1008_v9 = vadd.f32 %v1007_v11, %v1006_v12  ;;  %v1022_v15 = vadd.f32 %v1021_v17, %v1020_v13  ;;  %v979_v28 = vmul.f32 %v1809_v55, %v945_v24  ;;  %v980_v38 = vmul.f32 %v1799_v29, %v947_v26  ;;  %v1450_v26 = vld [vmem:[%s1884_s7] sm:$0xff]  }
 0x234   : > { %v1033_v27 = vadd.f32 %v1032_v22, %v1031_v19  ;;  %v1073_v57 = vpack.c.bf16 %v1065_v18, %v1065_v18 }
 0x235   : > { %v1064_v53 = vmul.f32 %v1490_v62, %v1008_v9  ;;  %v1023_v37 = vrot.slane %v1022_v15, 2  ;;  %v1037_v34 = vsel %vm709_vm3, %v979_v28, 0.0  ;;  %v1045_v29 = vsel %vm709_vm3, %v980_v38, 0.0  ;;  %v1496_v10 = vpop.eup %1495  ;;  %v1332_v9 = vld [vmem:[%s1883_s6] ss:$0 sm:$0xff] }
 0x236   : > { %v1034_v20 = vrot.slane %v1033_v27, 1  ;;  %v1038_v31 = vadd.f32 %v1037_v34, %v1036_v32  ;;  %v949_v33 = vpop.permute.xlu1 %948  ;;  %v1098_v45 = vunpack.c.l.b16 %v1073_v57 }
 0x237   : > { %v1072_v40 = vpack.c.bf16 %v1064_v53, %v1064_v53  ;;  %v1024_v21 = vadd.f32 %v1023_v37, %v1022_v15  ;;  %v981_v55 = vmul.f32 %v1801_v52, %v949_v33 }
 0x238   : > { %v1035_v42 = vadd.f32 %v1034_v20, %v1033_v27  ;;  %v1039_v25 = vrot.slane %v1038_v31, 4 }
 0x239   : > { %v1097_v30 = vunpack.c.l.b16 %v1072_v40  ;;  %v1025_v48 = vrot.slane %v1024_v21, 1  ;;  %v1046_v7 = vsel %vm709_vm3, %v981_v55, 0.0 }
 0x23a   : > { %v1067_v2 = vmul.f32 %v1492_v39, %v1035_v42  ;;  %v1040_v60 = vadd.f32 %v1039_v25, %v1038_v31  ;;  %v1047_v50 = vadd.f32 %v1046_v7, %v1045_v29 }
 0x23b   : > { %v1026_v51 = vadd.f32 %v1025_v48, %v1024_v21  ;;  %v1106_v36 = vsel %vm1105_vm6, %v1097_v30, %v1104_v16 }
 0x23c   : > { %v1041_v54 = vrot.slane %v1040_v60, 2  ;;  %v1048_v52 = vrot.slane %v1047_v50, 4  ;;  %v1108_v59 = vsel %vm1107_vm7, %v1098_v45, %v1106_v36  ;;  %v1075_v61 = vpack.c.bf16 %v1067_v2, %v1067_v2 }
 0x23d   : > { %v1066_v41 = vmul.f32 %v1494_v58, %v1026_v51  ;;  %v1498_v14 = vpop.eup %1497 }
 0x23e   : > { %v1042_v63 = vadd.f32 %v1041_v54, %v1040_v60  ;;  %v1049_v8 = vadd.f32 %v1048_v52, %v1047_v50  ;;  %v1100_v6 = vunpack.c.l.b16 %v1075_v61 }
 0x23f   : > { %v1074_v0 = vpack.c.bf16 %v1066_v41, %v1066_v41 }
 0x240   : > { %v1043_v3 = vrot.slane %v1042_v63, 1  ;;  %v1050_v4 = vrot.slane %v1049_v8, 2 }
 0x241   : > { %v1099_v5 = vunpack.c.l.b16 %v1074_v0 }
 0x242   : > { %v1044_v43 = vadd.f32 %v1043_v3, %v1042_v63  ;;  %v1051_v46 = vadd.f32 %v1050_v4, %v1049_v8 }
 0x243   : > { %v1110_v56 = vsel %vm1109_vm8, %v1099_v5, %v1108_v59 }
 0x244   : > { %v1068_v49 = vmul.f32 %v1496_v10, %v1044_v43  ;;  %v1052_v12 = vrot.slane %v1051_v46, 1  ;;  %v1112_v13 = vsel %vm1111_vm9, %v1100_v6, %v1110_v56 }
 0x246   : > { %v1053_v19 = vadd.f32 %v1052_v12, %v1051_v46  ;;  %v1076_v1 = vpack.c.bf16 %v1068_v49, %v1068_v49 }
 0x248   : > { %v1069_v47 = vmul.f32 %v1498_v14, %v1053_v19  ;;  %v1101_v16 = vunpack.c.l.b16 %v1076_v1 }
 0x24a   : > { %v1077_v18 = vpack.c.bf16 %v1069_v47, %v1069_v47  ;;  %v1114_v11 = vsel %vm1113_vm10, %v1101_v16, %v1112_v13 }
 0x24c   : > { %v1102_v17 = vunpack.c.l.b16 %v1077_v18 }
 0x24e   : > { %v1116_v62 = vsel %vm1115_vm11, %v1102_v17, %v1114_v11 }
 0x24f   : > { %v1117_v22 = vpack.c.b16 %v1116_v62, %v1116_v62 }
 0x251   : > { %1118 = vrot.lane.b32.xlu0 %v1117_v22, %s1510_s14 }
 0x2c3   : > { %v1119_v24 = vpop.permute.xlu0 %1118 }
 0x2c4   : > { %1412 = vmatmul.mubr.msk.bf16.vlgmr.msra.gmra.mxu0 %vm1126_vm12, %v1119_v24 }
 0x2c5   : > { %1416 = vmatpush3.bf16.msra.mxu0 %v1449_v23  ;;  %1419 = vmatprep.mubr.msk.bf16.mxu0 %vm1509_vm4, %v1508_v44 }
 0x2c6   : > { %1417 = vmatprep.subr.bf16.mxu0 %v1508_v44  ;;  %v1335_v44 = vld [vmem:[%s1885_s8] ss:$0 sm:$0xff] }
 0x2c9   : > { %1418 = vmatpush3.bf16.msra.mxu0 %v1450_v26 }
 0x384   : > { %v1164_v15 = vpop.f32.mrf.mxu0 }
 0x385   : > { %v1165_v28 = vadd.f32 %v1332_v9, %v1164_v15 }
 0x386   : > { %v1413_v27 = vpop.f32.mrf.mxu0 }
 0x387   : > { %v1170_v32 = vmax.f32 %v1165_v28, 0.0 }
 0x388   : > { %v1167_v35 = vpop.f32.mrf.mxu0 }
 0x389   : > { %v1171_v53 = vpack.c.bf16 %v1170_v32, %v1170_v32 }
 0x38a   : > { %v1414_v37 = vpop.f32.mrf.mxu0 }
 0x38b   : > { %1420 = vmatmul.mubr.msk.bf16.vlgmr.msra.gmra.mxu0 %vm1195_vm13, %v1171_v53 }
 0x44b   : > { %v1233_v34 = vpop.f32.mrf.mxu0 }
 0x44c   : > { %v1234_v38 = vadd.f32 %v1335_v44, %v1233_v34 }
 0x44d   : > { %v1421_v57 = vpop.f32.mrf.mxu0 }
 0x44e   : > { %1240 = vst.msk [vmem:[%s332_s26] sm:$0xff] %vm1239_vm14, %v1234_v38 }
 0x44f   : > { %v1236_v20 = vpop.f32.mrf.mxu0 }
 0x451   : > { %v1422_v31 = vpop.f32.mrf.mxu0 }
 0x452 PF: > { %s19_s30 = sadd.s32 1, %s1505_s30  }
 0x453   : > { %p16_p5 = scmp.ge.s32.totalorder %s19_s30, 4  }
 0x455   :  { %18 = sbr.rel (!%p16_p5) target bundleno = 1 (0x1), region = 86 }

</bundles_post_ra>
